<compile_context>
chip_gen: v6e
topology: v6e:2x2x1
jax: 0.10.0
libtpu: 0.0.40
codegen_flags: <defaults>
</compile_context>

<pallas_src>
import math

import jax
import jax.numpy as jnp
from jax.experimental import pallas as pl
from jax.experimental.pallas import tpu as pltpu


_MAX_TILE = 512                        # 128-aligned; ~85% of HBM roofline per measurements
_MAX_BLOCK_BYTES = 2 * 1024 * 1024     # per-block cap; 2x(in+out) double buffers fit v5e's 16 MiB


def _sublane_min(dtype):
    itemsize = jnp.dtype(dtype).itemsize
    return {4: 8, 2: 16, 1: 32}.get(itemsize, 8)


def _round_up(x, m):
    return ((x + m - 1) // m) * m


def _pick_spatial_tile(S):
    """Tile (and padded extent) for the flattened spatial axis."""
    if S <= _MAX_TILE:
        return S, S                    # single full-extent block (layout-rule exempt)
    for t in (512, 384, 256, 128):
        if S % t == 0:
            return t, S
    return 512, _round_up(S, 512)      # fallback: pad S, sliced off after the kernel


def _pick_channel_tile(C, itemsize, tS):
    """Channel tile (and padded channel count)."""
    if C <= 128:
        return C, C                    # keep the full channel dim in one block
    C_pad = _round_up(C, 128)
    for t in (512, 256, 128):
        if C_pad % t == 0 and t * tS * itemsize <= _MAX_BLOCK_BYTES:
            return t, C_pad
    return 128, C_pad


def _pick_batch_tile(B, C_pad, tS, itemsize, smin):
    """Smallest batch tile TB (dividing B) that makes TB*C sublane-dense."""
    best = 1
    for d in range(1, B + 1):
        if B % d:
            continue
        if d * C_pad * tS * itemsize > _MAX_BLOCK_BYTES:
            break
        best = d
        if (d * C_pad) % smin == 0:
            return d
    return best


def _perm_kernel(x_ref, o_ref):
    # x_ref: (TB, tS, tC) input tile; o_ref: (1, TB*tC, tS) output tile.
    tb, _, tc = x_ref.shape
    for i in range(tb):                                   # static unroll over batch rows
        o_ref[0, i * tc:(i + 1) * tc, :] = jnp.transpose(x_ref[i], (1, 0))


def trans_to_cis_perm(x):
    """Permute (B, D1, ..., DN, C) -> (B, C, D1, ..., DN) with a Pallas kernel."""
    B = x.shape[0]
    C = x.shape[-1]
    spatial = x.shape[1:-1]
    S = math.prod(spatial)
    itemsize = jnp.dtype(x.dtype).itemsize
    smin = _sublane_min(x.dtype)

    # glue: collapse the spatial dims (no data reordering in this reshape)
    x_flat = x.reshape(B, S, C)

    tS, S_pad = _pick_spatial_tile(S)
    tC, C_pad = _pick_channel_tile(C, itemsize, tS)

    if C_pad <= 128:
        # Small channel count: pack TB batches into each output block so the
        # sublane dim (TB*C) is dense; the channel axis is not tiled.
        TB = _pick_batch_tile(B, C_pad, tS, itemsize, smin)
        tBC = TB * C_pad
    else:
        TB = 1
        tBC = tC

    # glue: pad ragged S / C up to the tile grid (sliced off after the kernel)
    if S_pad != S or C_pad != C:
        x_flat = jnp.pad(x_flat, ((0, 0), (0, S_pad - S), (0, C_pad - C)))

    nB = B // TB
    nS = S_pad // tS
    nC = (TB * C_pad) // tBC

    out3d = pl.pallas_call(
        _perm_kernel,
        out_shape=jax.ShapeDtypeStruct((nB, TB * C_pad, S_pad), x.dtype),
        grid_spec=pl.GridSpec(
            grid=(nB, nS, nC),
            in_specs=[
                pl.BlockSpec((TB, tS, tC), lambda b, s, c: (b, s, c)),
            ],
            out_specs=pl.BlockSpec((1, tBC, tS), lambda b, s, c: (b, c, s)),
        ),
        compiler_params=pltpu.CompilerParams(
            # Batch tiles and spatial tiles are independent -> both v7x
            # TensorCores get work even when B == 1 or odd.
            dimension_semantics=("parallel", "parallel", "arbitrary"),
        ),
    )(x_flat)

    # glue: ungroup packed batches, drop any padding, split spatial dims back out
    out = out3d.reshape(B, C_pad, S_pad)[:, :C, :S]
    return out.reshape((B, C) + spatial)


if __name__ == "__main__":
    key = jax.random.PRNGKey(0)

    # Case 1: transformer order (batch, D1, D2, channels) with tiny C
    # -> exercises the batch-packed (sublane-dense) output path.
    B, D1, D2, C = 2, 16, 16, 4
    x = jax.random.normal(key, (B, D1, D2, C), dtype=jnp.float32)
    out = jax.block_until_ready(trans_to_cis_perm(x))
    ref = jnp.transpose(x, (0, 3, 1, 2))
    assert out.shape == (B, C, D1, D2), out.shape
    assert out.dtype == x.dtype, out.dtype
    assert jnp.allclose(out, ref), "mismatch vs reference permute (small-C path)"

    # Case 2: larger channel count -> exercises the channel-tiled path.
    B2, E1, E2, C2 = 2, 8, 16, 256
    x2 = jax.random.normal(jax.random.PRNGKey(0), (B2, E1, E2, C2), dtype=jnp.float32)
    out2 = jax.block_until_ready(trans_to_cis_perm(x2))
    ref2 = jnp.transpose(x2, (0, 3, 1, 2))
    assert out2.shape == (B2, C2, E1, E2), out2.shape
    assert jnp.allclose(out2, ref2), "mismatch vs reference permute (large-C path)"

    print("KERNEL_OK")
</pallas_src>

<mosaic_0001>
module attributes {stable_mosaic.version = 11 : i64} {
  func.func @_perm_kernel(%arg0: i32, %arg1: i32, %arg2: i32, %arg3: memref<2x256x4xf32, #tpu.memory_space<vmem>>, %arg4: memref<1x8x256xf32, #tpu.memory_space<vmem>>) attributes {dimension_semantics = [#tpu.dimension_semantics<parallel>, #tpu.dimension_semantics<parallel>, #tpu.dimension_semantics<arbitrary>], iteration_bounds = array<i64: 1, 1, 1>, scalar_prefetch = 0 : i64, scratch_operands = 0 : i64, tpu.core_type = #tpu.core_type<tc>, window_params = [{transform_indices = @transform_0, window_bounds = array<i64: 2, 256, 4>}, {transform_indices = @transform_1, window_bounds = array<i64: 1, 8, 256>}]} {
    %c0 = arith.constant 0 : index
    %c0_0 = arith.constant 0 : index
    %c0_1 = arith.constant 0 : index
    %0 = vector.load %arg3[%c0, %c0_0, %c0_1] : memref<2x256x4xf32, #tpu.memory_space<vmem>>, vector<1x256x4xf32>
    %1 = vector.shape_cast %0 : vector<1x256x4xf32> to vector<256x4xf32>
    %2 = tpu.transpose %1, [1, 0] : vector<256x4xf32> -> vector<4x256xf32>
    %c0_2 = arith.constant 0 : index
    %c0_3 = arith.constant 0 : index
    %c0_4 = arith.constant 0 : index
    %3 = vector.load %arg4[%c0_2, %c0_3, %c0_4] : memref<1x8x256xf32, #tpu.memory_space<vmem>>, vector<1x4x256xf32>
    %4 = vector.shape_cast %3 : vector<1x4x256xf32> to vector<4x256xf32>
    %5 = vector.shape_cast %2 : vector<4x256xf32> to vector<1x4x256xf32>
    tpu.vector_store %arg4[%c0_2, %c0_3, %c0_4], %5 {strides = array<i32>} : memref<1x8x256xf32, #tpu.memory_space<vmem>>, vector<1x4x256xf32>,
    %c1 = arith.constant 1 : index
    %c0_5 = arith.constant 0 : index
    %c0_6 = arith.constant 0 : index
    %6 = vector.load %arg3[%c1, %c0_5, %c0_6] : memref<2x256x4xf32, #tpu.memory_space<vmem>>, vector<1x256x4xf32>
    %7 = vector.shape_cast %6 : vector<1x256x4xf32> to vector<256x4xf32>
    %8 = tpu.transpose %7, [1, 0] : vector<256x4xf32> -> vector<4x256xf32>
    %c0_7 = arith.constant 0 : index
    %c4 = arith.constant 4 : index
    %c0_8 = arith.constant 0 : index
    %9 = vector.load %arg4[%c0_7, %c4, %c0_8] : memref<1x8x256xf32, #tpu.memory_space<vmem>>, vector<1x4x256xf32>
    %10 = vector.shape_cast %9 : vector<1x4x256xf32> to vector<4x256xf32>
    %11 = vector.shape_cast %8 : vector<4x256xf32> to vector<1x4x256xf32>
    tpu.vector_store %arg4[%c0_7, %c4, %c0_8], %11 {strides = array<i32>} : memref<1x8x256xf32, #tpu.memory_space<vmem>>, vector<1x4x256xf32>,
    return
  }
  func.func @transform_0(%arg0: i32, %arg1: i32, %arg2: i32) -> (i32, i32, i32) {
    %c0_i32 = arith.constant 0 : i32
    return %arg0, %arg1, %arg2 : i32, i32, i32
  }
  func.func @transform_1(%arg0: i32, %arg1: i32, %arg2: i32) -> (i32, i32, i32) {
    %c0_i32 = arith.constant 0 : i32
    return %arg0, %arg2, %arg1 : i32, i32, i32
  }
}

</mosaic_0001>

<bundles_post_ra>
// kernel: tpu_custom_call.1
= control target key start
LH: loop header
LB: loop body
LE: loop exit
PB: predicated region body
PF: predicated region fallthrough
CT: control target
= control target key end

     0   :  { %s487_s0 = inlined_call_operand.vmem [shape: f32[2,256,4], index: 0, kind: input, shape index: {}]   ;;  %s488_s1 = inlined_call_operand.hbm [shape: f32[1,8,256], index: 1, kind: output, shape index: {}]  }
   0x1   :  { %v25_v0 = vld [vmem:[%s487_s0 + $0x80] sm:$0xff]  ;;  %v26_v2 = vld [vmem:[%s487_s0 + $0x88] sm:$0xff]  ;;  %v27_v4 = vld [vmem:[%s487_s0 + $0x90] sm:$0xff] }
   0x2   :  { %v9_v1 = vld [vmem:[%s487_s0] sm:$0xff]  ;;  %73 = vxpose.xlu1.b32.start [1/16] (narrow) %v25_v0, 8  ;;  %v10_v3 = vld [vmem:[%s487_s0 + $0x8] sm:$0xff]  ;;  %v11_v5 = vld [vmem:[%s487_s0 + $0x10] sm:$0xff] }
   0x3   :  { %41 = vxpose.xlu0.b32.start [1/16] (narrow) %v9_v1, 8  ;;  %v28_v6 = vld [vmem:[%s487_s0 + $0x98] sm:$0xff]  ;;  %v29_v8 = vld [vmem:[%s487_s0 + $0xa0] sm:$0xff]  ;;  %v30_v10 = vld [vmem:[%s487_s0 + $0xa8] sm:$0xff] }
   0x4   :  { %v12_v7 = vld [vmem:[%s487_s0 + $0x18] sm:$0xff]  ;;  %v13_v9 = vld [vmem:[%s487_s0 + $0x20] sm:$0xff]  ;;  %v14_v11 = vld [vmem:[%s487_s0 + $0x28] sm:$0xff] }
   0x6   :  { %74 = vxpose.xlu1.b32.cont [2/16] (narrow) %v26_v2, 8 }
   0x7   :  { %42 = vxpose.xlu0.b32.cont [2/16] (narrow) %v10_v3, 8 }
   0xa   :  { %75 = vxpose.xlu1.b32.cont [3/16] (narrow) %v27_v4, 8 }
   0xb   :  { %43 = vxpose.xlu0.b32.cont [3/16] (narrow) %v11_v5, 8 }
   0xe   :  { %76 = vxpose.xlu1.b32.cont [4/16] (narrow) %v28_v6, 8 }
   0xf   :  { %44 = vxpose.xlu0.b32.cont [4/16] (narrow) %v12_v7, 8 }
  0x12   :  { %77 = vxpose.xlu1.b32.cont [5/16] (narrow) %v29_v8, 8 }
  0x13   :  { %45 = vxpose.xlu0.b32.cont [5/16] (narrow) %v13_v9, 8 }
  0x16   :  { %78 = vxpose.xlu1.b32.cont [6/16] (narrow) %v30_v10, 8 }
  0x17   :  { %46 = vxpose.xlu0.b32.cont [6/16] (narrow) %v14_v11, 8 }
  0x18   :  { %6 = vsyncpa [#allocation3], 0  ;;  %v31_v12 = vld [vmem:[%s487_s0 + $0xb0] sm:$0xff]  ;;  %v32_v14 = vld [vmem:[%s487_s0 + $0xb8] sm:$0xff]  ;;  %s281_s18 = smov [#allocation2]  }
  0x19   :  { %v15_v13 = vld [vmem:[%s487_s0 + $0x30] sm:$0xff]  ;;  %v16_v15 = vld [vmem:[%s487_s0 + $0x38] sm:$0xff]  ;;  %v33_v16 = vld [vmem:[%s487_s0 + $0xc0] sm:$0xff]  ;;  %s218_s19 = sshll.u32 %s281_s18, 4  ;;  %s219_s19 = int_to_ptr.vmem [resolvable:$true] %s218_s19 }
  0x1a   :  { %79 = vxpose.xlu1.b32.cont [7/16] (narrow) %v31_v12, 8  ;;  %v17_v17 = vld [vmem:[%s487_s0 + $0x40] sm:$0xff]  ;;  %v34_v18 = vld [vmem:[%s487_s0 + $0xc8] sm:$0xff]  ;;  %v35_v20 = vld [vmem:[%s487_s0 + $0xd0] sm:$0xff]  ;;  %s259_s20 = scalar_lea.vmem %s219_s19, 256  ;;  %p264_p1 = scmp.lt.s32.totalorder %s219_s19, %s219_s19 }
  0x1b   :  { %47 = vxpose.xlu0.b32.cont [7/16] (narrow) %v15_v13, 8  ;;  %v18_v19 = vld [vmem:[%s487_s0 + $0x48] sm:$0xff]  ;;  %v19_v21 = vld [vmem:[%s487_s0 + $0x50] sm:$0xff]  ;;  %v36_v22 = vld [vmem:[%s487_s0 + $0xd8] sm:$0xff]  ;;  %p260_p0 = scmp.ne.s32.totalorder %s219_s19, %s259_s20  ;;  %p265_p2 = scmp.lt.s32.totalorder %s259_s20, %s259_s20 }
  0x1c   :  { %v20_v23 = vld [vmem:[%s487_s0 + $0x58] sm:$0xff]  ;;  %v37_v24 = vld [vmem:[%s487_s0 + $0xe0] sm:$0xff]  ;;  %v38_v26 = vld [vmem:[%s487_s0 + $0xe8] sm:$0xff] }
  0x1d   :  { %v21_v25 = vld [vmem:[%s487_s0 + $0x60] sm:$0xff]  ;;  %v22_v27 = vld [vmem:[%s487_s0 + $0x68] sm:$0xff]  ;;  %v39_v28 = vld [vmem:[%s487_s0 + $0xf0] sm:$0xff]  ;;  %p266_p3 = por %p265_p2, %p264_p1 }
  0x1e   :  { %80 = vxpose.xlu1.b32.cont [8/16] (narrow) %v32_v14, 8  ;;  %v23_v29 = vld [vmem:[%s487_s0 + $0x70] sm:$0xff]  ;;  %v40_v30 = vld [vmem:[%s487_s0 + $0xf8] sm:$0xff]  ;;  %v242_v32 = vld [vmem:[%s487_s0 + $0x180] sm:$0xff] }
  0x1f   :  { %48 = vxpose.xlu0.b32.cont [8/16] (narrow) %v16_v15, 8  ;;  %v24_v31 = vld [vmem:[%s487_s0 + $0x78] sm:$0xff]  ;;  %v226_v33 = vld [vmem:[%s487_s0 + $0x100] sm:$0xff]  ;;  %v243_v34 = vld [vmem:[%s487_s0 + $0x188] sm:$0xff]  ;;  %p267_p4 = pnand %p266_p3, %p260_p0 }
  0x20   :  { %v227_v35 = vld [vmem:[%s487_s0 + $0x108] sm:$0xff]  ;;  %v244_v36 = vld [vmem:[%s487_s0 + $0x190] sm:$0xff]  ;;  %v245_v38 = vld [vmem:[%s487_s0 + $0x198] sm:$0xff] }
  0x21   :  { %v228_v37 = vld [vmem:[%s487_s0 + $0x110] sm:$0xff]  ;;  %v229_v39 = vld [vmem:[%s487_s0 + $0x118] sm:$0xff]  ;;  %v246_v40 = vld [vmem:[%s487_s0 + $0x1a0] sm:$0xff] }
  0x22   :  { %81 = vxpose.xlu1.b32.cont [9/16] (narrow) %v33_v16, 8  ;;  %v230_v41 = vld [vmem:[%s487_s0 + $0x120] sm:$0xff]  ;;  %v247_v42 = vld [vmem:[%s487_s0 + $0x1a8] sm:$0xff]  ;;  %v248_v44 = vld [vmem:[%s487_s0 + $0x1b0] sm:$0xff] }
  0x23   :  { %49 = vxpose.xlu0.b32.cont [9/16] (narrow) %v17_v17, 8  ;;  %v231_v43 = vld [vmem:[%s487_s0 + $0x128] sm:$0xff]  ;;  %v232_v45 = vld [vmem:[%s487_s0 + $0x130] sm:$0xff]  ;;  %v249_v46 = vld [vmem:[%s487_s0 + $0x1b8] sm:$0xff] }
  0x24   :  { %v233_v47 = vld [vmem:[%s487_s0 + $0x138] sm:$0xff]  ;;  %v250_v48 = vld [vmem:[%s487_s0 + $0x1c0] sm:$0xff]  ;;  %v251_v50 = vld [vmem:[%s487_s0 + $0x1c8] sm:$0xff] }
  0x25   :  { %v234_v49 = vld [vmem:[%s487_s0 + $0x140] sm:$0xff]  ;;  %v235_v51 = vld [vmem:[%s487_s0 + $0x148] sm:$0xff]  ;;  %v252_v52 = vld [vmem:[%s487_s0 + $0x1d0] sm:$0xff] }
  0x26   :  { %82 = vxpose.xlu1.b32.cont [10/16] (narrow) %v34_v18, 8  ;;  %v236_v53 = vld [vmem:[%s487_s0 + $0x150] sm:$0xff]  ;;  %v253_v54 = vld [vmem:[%s487_s0 + $0x1d8] sm:$0xff]  ;;  %v254_v56 = vld [vmem:[%s487_s0 + $0x1e0] sm:$0xff] }
  0x27   :  { %50 = vxpose.xlu0.b32.cont [10/16] (narrow) %v18_v19, 8  ;;  %v237_v55 = vld [vmem:[%s487_s0 + $0x158] sm:$0xff]  ;;  %v238_v57 = vld [vmem:[%s487_s0 + $0x160] sm:$0xff]  ;;  %v255_v58 = vld [vmem:[%s487_s0 + $0x1e8] sm:$0xff] }
  0x28   :  { %v239_v59 = vld [vmem:[%s487_s0 + $0x168] sm:$0xff]  ;;  %v256_v60 = vld [vmem:[%s487_s0 + $0x1f0] sm:$0xff]  ;;  %v257_v62 = vld [vmem:[%s487_s0 + $0x1f8] sm:$0xff] }
  0x29   :  { %v240_v61 = vld [vmem:[%s487_s0 + $0x170] sm:$0xff]  ;;  %v241_v63 = vld [vmem:[%s487_s0 + $0x178] sm:$0xff] }
  0x2a   :  { %83 = vxpose.xlu1.b32.cont [11/16] (narrow) %v35_v20, 8 }
  0x2b   :  { %51 = vxpose.xlu0.b32.cont [11/16] (narrow) %v19_v21, 8 }
  0x2e   :  { %84 = vxpose.xlu1.b32.cont [12/16] (narrow) %v36_v22, 8 }
  0x2f   :  { %52 = vxpose.xlu0.b32.cont [12/16] (narrow) %v20_v23, 8 }
  0x32   :  { %85 = vxpose.xlu1.b32.cont [13/16] (narrow) %v37_v24, 8 }
  0x33   :  { %53 = vxpose.xlu0.b32.cont [13/16] (narrow) %v21_v25, 8 }
  0x36   :  { %86 = vxpose.xlu1.b32.cont [14/16] (narrow) %v38_v26, 8 }
  0x37   :  { %54 = vxpose.xlu0.b32.cont [14/16] (narrow) %v22_v27, 8 }
  0x3a   :  { %87 = vxpose.xlu1.b32.cont [15/16] (narrow) %v39_v28, 8 }
  0x3b   :  { %55 = vxpose.xlu0.b32.cont [15/16] (narrow) %v23_v29, 8 }
  0x3e   :  { %88 = vxpose.xlu1.b32.end [16/16] (narrow) %v40_v30, 8 }
  0x3f   :  { %56 = vxpose.xlu0.b32.end [16/16] (narrow) %v24_v31, 8 }
  0x42   :  { %172 = vxpose.xlu1.b32.start [1/16] (narrow) %v242_v32, 8 }
  0x43   :  { %140 = vxpose.xlu0.b32.start [1/16] (narrow) %v226_v33, 8 }
  0x46   :  { %173 = vxpose.xlu1.b32.cont [2/16] (narrow) %v243_v34, 8 }
  0x47   :  { %141 = vxpose.xlu0.b32.cont [2/16] (narrow) %v227_v35, 8 }
  0x4a   :  { %174 = vxpose.xlu1.b32.cont [3/16] (narrow) %v244_v36, 8 }
  0x4b   :  { %142 = vxpose.xlu0.b32.cont [3/16] (narrow) %v228_v37, 8 }
  0x4e   :  { %175 = vxpose.xlu1.b32.cont [4/16] (narrow) %v245_v38, 8 }
  0x4f   :  { %143 = vxpose.xlu0.b32.cont [4/16] (narrow) %v229_v39, 8 }
  0x52   :  { %176 = vxpose.xlu1.b32.cont [5/16] (narrow) %v246_v40, 8 }
  0x53   :  { %144 = vxpose.xlu0.b32.cont [5/16] (narrow) %v230_v41, 8 }
  0x56   :  { %177 = vxpose.xlu1.b32.cont [6/16] (narrow) %v247_v42, 8 }
  0x57   :  { %145 = vxpose.xlu0.b32.cont [6/16] (narrow) %v231_v43, 8 }
  0x5a   :  { %178 = vxpose.xlu1.b32.cont [7/16] (narrow) %v248_v44, 8 }
  0x5b   :  { %146 = vxpose.xlu0.b32.cont [7/16] (narrow) %v232_v45, 8 }
  0x5e   :  { %179 = vxpose.xlu1.b32.cont [8/16] (narrow) %v249_v46, 8 }
  0x5f   :  { %147 = vxpose.xlu0.b32.cont [8/16] (narrow) %v233_v47, 8 }
  0x62   :  { %180 = vxpose.xlu1.b32.cont [9/16] (narrow) %v250_v48, 8 }
  0x63   :  { %148 = vxpose.xlu0.b32.cont [9/16] (narrow) %v234_v49, 8 }
  0x66   :  { %181 = vxpose.xlu1.b32.cont [10/16] (narrow) %v251_v50, 8 }
  0x67   :  { %149 = vxpose.xlu0.b32.cont [10/16] (narrow) %v235_v51, 8 }
  0x6a   :  { %182 = vxpose.xlu1.b32.cont [11/16] (narrow) %v252_v52, 8 }
  0x6b   :  { %150 = vxpose.xlu0.b32.cont [11/16] (narrow) %v236_v53, 8 }
  0x6e   :  { %183 = vxpose.xlu1.b32.cont [12/16] (narrow) %v253_v54, 8 }
  0x6f   :  { %151 = vxpose.xlu0.b32.cont [12/16] (narrow) %v237_v55, 8 }
  0x72   :  { %184 = vxpose.xlu1.b32.cont [13/16] (narrow) %v254_v56, 8 }
  0x73   :  { %152 = vxpose.xlu0.b32.cont [13/16] (narrow) %v238_v57, 8 }
  0x76   :  { %185 = vxpose.xlu1.b32.cont [14/16] (narrow) %v255_v58, 8 }
  0x77   :  { %153 = vxpose.xlu0.b32.cont [14/16] (narrow) %v239_v59, 8 }
  0x7a   :  { %186 = vxpose.xlu1.b32.cont [15/16] (narrow) %v256_v60, 8 }
  0x7b   :  { %154 = vxpose.xlu0.b32.cont [15/16] (narrow) %v240_v61, 8 }
  0x7e   :  { %187 = vxpose.xlu1.b32.end [16/16] (narrow) %v257_v62, 8  ;;  %v89_v0 = vpop.trf.xlu1 }
  0x7f   :  { %155 = vxpose.xlu0.b32.end [16/16] (narrow) %v241_v63, 8  ;;  %v57_v1 = vpop.trf.xlu0  ;;  %106 = vst [vmem:[#allocation2 + $0x8] sm:$0xf] %v89_v0 }
  0x80   :  { %105 = vst [vmem:[#allocation2] sm:$0xf] %v57_v1 }
  0xbe   :  { %v188_v2 = vpop.trf.xlu1 }
  0xbf   :  { %v156_v3 = vpop.trf.xlu0  ;;  %v207_v4 = vrot.slane %v188_v2, 4 }
  0xc0   :  { %v206_v5 = vrot.slane %v156_v3, 4 }
  0xc1   :  { %211 = vst [vmem:[#allocation2 + $0x8] sm:$0xf0] %v207_v4 }
  0xc2   :  { %210 = vst [vmem:[#allocation2] sm:$0xf0] %v206_v5 }
  0xc3   :  { %270 = shalt.err (!%p267_p4)
}
  0xc4   :  { %221 = dma.vmem_to_hbm [thread:$0]  %s219_s19, 256, %s488_s1, [#allocation3]  }
  0xc5   :  { %279 = dma.done.wait [#allocation3], 256  }
  0xc6   :  { %280 = vsyncadd [#allocation3], 4294967040 }
  0xc7   :  { %225 = vsyncpa [#allocation3], 1 }

</bundles_post_ra>
